<compile_context>
chip_gen: v7x
topology: tpu7x:2x2x1
jax: 0.10.0
libtpu: 0.0.40
codegen_flags: <defaults>
</compile_context>

<pallas_src>
import jax
import jax.numpy as jnp
from jax.experimental import pallas as pl
from jax.experimental.pallas import tpu as pltpu


def _make_kernel(c_valid, compute_dtype):
    """Build the per-batch-tile kernel (c_valid / compute_dtype are static)."""

    def kernel(msg_ref, x_ref, w_ref, b_ref, o_ref):
        # msg_ref: (TB, H)     encoded messages (compute_dtype)
        # x_ref:   (TB*Cp, F)  candidate features, batch-major (compute_dtype)
        # w_ref:   (F, H)      Linear weight, pre-transposed (compute_dtype)
        # b_ref:   (1, H)      Linear bias (f32)
        # o_ref:   (TB, Cp)    log-softmax over candidates (f32)
        tb, cp = o_ref.shape
        h = w_ref.shape[1]

        # One (TB*Cp, F) @ (F, H) matmul on the MXU, f32 accumulation.
        emb = jnp.dot(x_ref[...], w_ref[...],
                      preferred_element_type=jnp.float32)         # (TB*Cp, H) f32
        emb = emb + b_ref[...]                                    # bias (1, H) f32
        emb = jnp.tanh(emb.astype(compute_dtype))                 # EUP tanh
        emb = emb.reshape(tb, cp, h)                              # no-op: cp % 8 == 0

        msg = msg_ref[...].astype(jnp.float32)                    # (TB, H)
        # energies[b, c] = sum_h emb[b, c, h] * msg[b, h]  -> already in the
        # (TB, Cp) store layout; lane reduce on the XLU slot, f32 accumulate.
        e = jnp.sum(emb.astype(jnp.float32) * msg[:, None, :], axis=-1)

        if c_valid != cp:  # mask padded candidate columns
            col = jax.lax.broadcasted_iota(jnp.int32, (tb, cp), 1)
            e = jnp.where(col < c_valid, e, -jnp.inf)

        # Numerically-stable log-softmax over candidates (torch dim=1), f32.
        m = jnp.max(e, axis=-1, keepdims=True)
        z = e - m
        lse = jnp.log(jnp.sum(jnp.exp(z), axis=-1, keepdims=True))
        o_ref[...] = z - lse

    return kernel


def _step_vmem_bytes(tb, cp, f, h, itemsize):
    """Rough per-grid-step VMEM footprint (double-buffered blocks + live f32)."""
    x_blk = tb * cp * f * itemsize
    msg_blk = tb * h * itemsize
    out_blk = tb * cp * 4
    resident = f * h * itemsize + h * 4          # W + bias (grid-invariant)
    live = 2 * tb * cp * h * 4                   # f32 emb (+ cast copy)
    return 2 * (x_blk + msg_blk + out_blk) + resident + live


def _pick_batch_tile(B, cp, f, h, itemsize):
    """Batch-tile size.

    Small B: one tile == whole batch (full-extent blocks are always legal).
    Larger B: TB is a multiple of 8 chosen so that
      * M = TB*cp is >= 256 (fills the 256-wide MXU on v6e/v7x, fine for v5e),
      * the x block grows toward ~1 MiB (HBM-roofline-efficient DMA),
      * the per-step VMEM footprint stays under ~20 MiB (fits every generation
        once vmem_limit_bytes is raised explicitly),
      * there are >= 2 grid steps so both v7x TensorCores get work.
    """
    if B <= 16:
        return B

    budget = 20 << 20

    tb = -(-256 // max(cp, 1))          # ceil(256 / cp)
    tb = ((tb + 7) // 8) * 8
    # Grow TB until the x block reaches ~1 MiB (HBM roofline), VMEM permitting.
    while (tb * cp * f * itemsize < (1 << 20)
           and _step_vmem_bytes(2 * tb, cp, f, h, itemsize) <= budget
           and 2 * tb < B):
        tb *= 2
    # Shrink if over the per-step VMEM budget.
    while tb > 8 and _step_vmem_bytes(tb, cp, f, h, itemsize) > budget:
        tb //= 2
    tb = max(8, (tb // 8) * 8)
    # Don't exceed the (8-padded) batch.
    tb = min(tb, ((B + 7) // 8) * 8)
    # Guarantee >= 2 grid steps so dimension_semantics=("parallel",) actually
    # shards batch tiles across v7x's two TensorCores.
    if -(-B // tb) == 1:
        tb = max(8, (tb // 2 // 8) * 8)
    return tb


def receiver_forward(encoded_message, _input, weight, bias, *,
                     compute_dtype=jnp.bfloat16):
    """encoded_message: (B, H), _input: (B, C, F), weight: (H, F) (PyTorch
    Linear layout), bias: (H,). Returns log_softmax energies, (B, C) f32."""
    B, C, F_ = _input.shape
    H = encoded_message.shape[-1]
    Cp = ((C + 7) // 8) * 8
    itemsize = jnp.dtype(compute_dtype).itemsize

    TB = _pick_batch_tile(B, Cp, F_, H, itemsize)
    steps = pl.cdiv(B, TB)
    Bp = steps * TB

    # ---- one-time wrapper-side layout prep (cheap XLA ops in HBM) ----------
    x = _input.astype(compute_dtype)
    if Cp != C:
        x = jnp.pad(x, ((0, 0), (0, Cp - C), (0, 0)))
    if Bp != B:
        x = jnp.pad(x, ((0, Bp - B), (0, 0), (0, 0)))
    x_flat = x.reshape(Bp * Cp, F_)                 # free metadata reshape

    msg = encoded_message.astype(compute_dtype)
    if Bp != B:
        msg = jnp.pad(msg, ((0, Bp - B), (0, 0)))

    w_t = weight.T.astype(compute_dtype)            # (F, H): standard (M,K)@(K,N)
    b2 = bias.astype(jnp.float32).reshape(1, H)     # bias stays f32 (tiny)

    # ---- grid / block specs --------------------------------------------------
    x_block_bytes = TB * Cp * F_ * itemsize
    x_spec = pl.BlockSpec((TB * Cp, F_), lambda i: (i, 0))
    if steps > 1 and x_block_bytes < (512 << 10) and hasattr(pl, "Buffered"):
        try:  # deeper input pipeline hides DMA turnaround on small blocks
            x_spec = pl.BlockSpec((TB * Cp, F_), lambda i: (i, 0),
                                  pipeline_mode=pl.Buffered(3))
        except TypeError:
            x_spec = pl.BlockSpec((TB * Cp, F_), lambda i: (i, 0))

    vmem_need = _step_vmem_bytes(TB, Cp, F_, H, itemsize)
    # Explicit scoped-VMEM limit: v5e's default is only 16 MiB; cap below v7x's
    # 64 MiB physical.
    vmem_limit = min(48 << 20, max(32 << 20, 2 * vmem_need))

    out = pl.pallas_call(
        _make_kernel(C, compute_dtype),
        out_shape=jax.ShapeDtypeStruct((Bp, Cp), jnp.float32),
        grid_spec=pltpu.PrefetchScalarGridSpec(
            num_scalar_prefetch=0,
            grid=(steps,),
            in_specs=[
                pl.BlockSpec((TB, H), lambda i: (i, 0)),      # messages
                x_spec,                                       # candidates (flat)
                pl.BlockSpec((F_, H), lambda i: (0, 0)),      # W^T (shared)
                pl.BlockSpec((1, H), lambda i: (0, 0)),       # bias (shared)
            ],
            out_specs=pl.BlockSpec((TB, Cp), lambda i: (i, 0)),
        ),
        compiler_params=pltpu.CompilerParams(
            dimension_semantics=("parallel",),
            vmem_limit_bytes=vmem_limit,
        ),
    )(msg, x_flat, w_t, b2)

    if Bp != B or Cp != C:
        out = out[:B, :C]
    return out


def _reference(encoded_message, _input, weight, bias):
    emb = jnp.tanh(jnp.einsum("bcf,hf->bch", _input, weight) + bias)
    energies = jnp.einsum("bch,bh->bc", emb, encoded_message)
    return jax.nn.log_softmax(energies, axis=1)


if __name__ == "__main__":
    key = jax.random.PRNGKey(0)
    B, C, F_, H = 2, 8, 16, 32         # batch, n_candidates, n_features, linear_units

    k1, k2, k3, k4 = jax.random.split(key, 4)
    _input = jax.random.normal(k1, (B, C, F_), dtype=jnp.float32)
    encoded_message = jax.random.normal(k2, (B, H), dtype=jnp.float32)
    # deterministic "Linear" parameters (synthetic, not a checkpoint load)
    bound = 1.0 / (F_ ** 0.5)
    weight = jax.random.uniform(k3, (H, F_), minval=-bound, maxval=bound,
                                dtype=jnp.float32)
    bias = jax.random.uniform(k4, (H,), minval=-bound, maxval=bound,
                              dtype=jnp.float32)

    ref = _reference(encoded_message, _input, weight, bias)

    # 1) Exact-semantics path (f32 compute) must match the reference tightly.
    out_f32 = receiver_forward(encoded_message, _input, weight, bias,
                               compute_dtype=jnp.float32)
    out_f32 = jax.block_until_ready(out_f32)
    assert out_f32.shape == (B, C)
    assert jnp.allclose(out_f32, ref, atol=1e-5, rtol=1e-5)

    # 2) Default fast path (bf16 operands, f32 MXU accumulate + f32 softmax).
    out_bf16 = receiver_forward(encoded_message, _input, weight, bias)
    out_bf16 = jax.block_until_ready(out_bf16)
    assert out_bf16.shape == (B, C)
    assert bool(jnp.all(jnp.isfinite(out_bf16)))
    assert jnp.allclose(out_bf16, ref, atol=2.5e-1, rtol=0.0)

    # 3) Tail / padding path: B % TB != 0, C not a multiple of 8, multi-step grid.
    B2, C2 = 20, 5
    j1, j2 = jax.random.split(jax.random.PRNGKey(1))
    x2 = jax.random.normal(j1, (B2, C2, F_), dtype=jnp.float32)
    m2 = jax.random.normal(j2, (B2, H), dtype=jnp.float32)
    ref2 = _reference(m2, x2, weight, bias)
    out2 = receiver_forward(m2, x2, weight, bias, compute_dtype=jnp.float32)
    out2 = jax.block_until_ready(out2)
    assert out2.shape == (B2, C2)
    assert jnp.allclose(out2, ref2, atol=1e-5, rtol=1e-5)

    print("KERNEL_OK")
</pallas_src>

<mosaic_0001>
module attributes {stable_mosaic.version = 11 : i64} {
  func.func @kernel(%arg0: i32, %arg1: memref<2x32xf32, #tpu.memory_space<vmem>>, %arg2: memref<16x16xf32, #tpu.memory_space<vmem>>, %arg3: memref<16x32xf32, #tpu.memory_space<vmem>>, %arg4: memref<1x32xf32, #tpu.memory_space<vmem>>, %arg5: memref<2x8xf32, #tpu.memory_space<vmem>>) attributes {dimension_semantics = [#tpu.dimension_semantics<parallel>], iteration_bounds = array<i64: 1>, scalar_prefetch = 0 : i64, scratch_operands = 0 : i64, tpu.core_type = #tpu.core_type<tc>, window_params = [{transform_indices = @transform_0, window_bounds = array<i64: 2, 32>}, {transform_indices = @transform_1, window_bounds = array<i64: 16, 16>}, {pipeline_mode = #tpu.pipeline_mode<synchronous>, transform_indices = @transform_2, window_bounds = array<i64: 16, 32>}, {pipeline_mode = #tpu.pipeline_mode<synchronous>, transform_indices = @transform_3, window_bounds = array<i64: 1, 32>}, {transform_indices = @transform_4, window_bounds = array<i64: 2, 8>}]} {
    %c0 = arith.constant 0 : index
    %c0_0 = arith.constant 0 : index
    %0 = vector.load %arg2[%c0, %c0_0] : memref<16x16xf32, #tpu.memory_space<vmem>>, vector<16x16xf32>
    %c0_1 = arith.constant 0 : index
    %c0_2 = arith.constant 0 : index
    %1 = vector.load %arg3[%c0_1, %c0_2] : memref<16x32xf32, #tpu.memory_space<vmem>>, vector<16x32xf32>
    %cst = arith.constant dense<0.000000e+00> : vector<16x32xf32>
    %2 = tpu.matmul %0, %1, %cst {dimension_numbers = #tpu.dot_dimension_numbers<[1], [0], [0], [1], [0, 0, 1, 1], [], []>} : vector<16x16xf32>, vector<16x32xf32>, vector<16x32xf32> -> vector<16x32xf32>
    %c0_3 = arith.constant 0 : index
    %c0_4 = arith.constant 0 : index
    %3 = vector.load %arg4[%c0_3, %c0_4] : memref<1x32xf32, #tpu.memory_space<vmem>>, vector<1x32xf32>
    %4 = vector.broadcast %3 : vector<1x32xf32> to vector<16x32xf32>
    %5 = arith.addf %2, %4 : vector<16x32xf32>
    %6 = math.tanh %5 : vector<16x32xf32>
    %7 = vector.shape_cast %6 : vector<16x32xf32> to vector<2x8x32xf32>
    %c0_5 = arith.constant 0 : index
    %c0_6 = arith.constant 0 : index
    %8 = vector.load %arg1[%c0_5, %c0_6] : memref<2x32xf32, #tpu.memory_space<vmem>>, vector<2x32xf32>
    %9 = vector.shape_cast %8 : vector<2x32xf32> to vector<2x1x32xf32>
    %10 = vector.broadcast %9 : vector<2x1x32xf32> to vector<2x8x32xf32>
    %11 = arith.mulf %7, %10 : vector<2x8x32xf32>
    %cst_7 = arith.constant dense<0.000000e+00> : vector<2x8xf32>
    %12 = vector.multi_reduction <add>, %11, %cst_7 [2] : vector<2x8x32xf32> to vector<2x8xf32>
    %cst_8 = arith.constant dense<0xFF800000> : vector<2xf32>
    %13 = vector.multi_reduction <maximumf>, %12, %cst_8 [1] : vector<2x8xf32> to vector<2xf32>
    %14 = vector.shape_cast %13 : vector<2xf32> to vector<2x1xf32>
    %15 = vector.broadcast %14 : vector<2x1xf32> to vector<2x8xf32>
    %16 = arith.subf %12, %15 : vector<2x8xf32>
    %17 = math.exp %16 : vector<2x8xf32>
    %cst_9 = arith.constant dense<0.000000e+00> : vector<2xf32>
    %18 = vector.multi_reduction <add>, %17, %cst_9 [1] : vector<2x8xf32> to vector<2xf32>
    %19 = vector.shape_cast %18 : vector<2xf32> to vector<2x1xf32>
    %20 = math.log %19 : vector<2x1xf32>
    %21 = vector.broadcast %20 : vector<2x1xf32> to vector<2x8xf32>
    %22 = arith.subf %16, %21 : vector<2x8xf32>
    %c0_10 = arith.constant 0 : index
    %c0_11 = arith.constant 0 : index
    %23 = vector.load %arg5[%c0_10, %c0_11] : memref<2x8xf32, #tpu.memory_space<vmem>>, vector<2x8xf32>
    tpu.vector_store %arg5[%c0_10, %c0_11], %22 {strides = array<i32>} : memref<2x8xf32, #tpu.memory_space<vmem>>, vector<2x8xf32>,
    return
  }
  func.func @transform_0(%arg0: i32) -> (i32, i32) {
    %c0_i32 = arith.constant 0 : i32
    %c0_i32_0 = arith.constant 0 : i32
    return %arg0, %c0_i32 : i32, i32
  }
  func.func @transform_1(%arg0: i32) -> (i32, i32) {
    %c0_i32 = arith.constant 0 : i32
    %c0_i32_0 = arith.constant 0 : i32
    return %arg0, %c0_i32 : i32, i32
  }
  func.func @transform_2(%arg0: i32) -> (i32, i32) {
    %c0_i32 = arith.constant 0 : i32
    %c0_i32_0 = arith.constant 0 : i32
    %c0_i32_1 = arith.constant 0 : i32
    return %c0_i32, %c0_i32_0 : i32, i32
  }
  func.func @transform_3(%arg0: i32) -> (i32, i32) {
    %c0_i32 = arith.constant 0 : i32
    %c0_i32_0 = arith.constant 0 : i32
    %c0_i32_1 = arith.constant 0 : i32
    return %c0_i32, %c0_i32_0 : i32, i32
  }
  func.func @transform_4(%arg0: i32) -> (i32, i32) {
    %c0_i32 = arith.constant 0 : i32
    %c0_i32_0 = arith.constant 0 : i32
    return %arg0, %c0_i32 : i32, i32
  }
}

</mosaic_0001>

<bundles_post_ra>
// kernel: tpu_custom_call.1
= control target key start
LH: loop header
LB: loop body
LE: loop exit
PB: predicated region body
PF: predicated region fallthrough
CT: control target
= control target key end

     0   :  { %9 = vsyncpa [#allocation3], 0  ;;  %s537_s0 = inlined_call_operand.hbm [shape: f32[2,32], index: 0, kind: input, shape index: {}]   ;;  %s538_s1 = inlined_call_operand.hbm [shape: f32[16,16], index: 1, kind: input, shape index: {}]   ;;  %s539_s2 = inlined_call_operand.hbm [shape: f32[16,32], index: 2, kind: input, shape index: {}]   ;;  %s540_s3 = inlined_call_operand.vmem [shape: f32[1,32], index: 3, kind: input, shape index: {}]   ;;  %s541_s4 = inlined_call_operand.hbm [shape: f32[2,8], index: 4, kind: output, shape index: {}]  }
   0x1   :  { %10 = vsyncpa [#allocation6], 0 }
   0x2   :  { %11 = vsyncpa [#allocation4], 0  ;;  %s435_s15 = smov [#allocation5]   ;;  %s341_s19 = scalar_lea.hbm %s538_s1, 256 }
   0x3   :  { %s27_s16 = sshll.u32 %s435_s15, 4  ;;  %p342_p0 = scmp.ne.s32.totalorder %s538_s1, %s341_s19  ;;  %s28_s16 = int_to_ptr.vmem [resolvable:$true] %s27_s16 }
   0x4   :  { %p345_p1 = scmp.lt.u32.totalorder %s341_s19, %s538_s1 }
   0x6   :  { %p347_p2 = pnand %p345_p1, %p342_p0 }
   0x8   :  { %350 = shalt.err (!%p347_p2)
}
   0x9   :  { %s351_s24 = scalar_lea.vmem %s28_s16, 256  ;;  %p356_p4 = scmp.lt.s32.totalorder %s28_s16, %s28_s16 }
   0xa   :  { %p352_p3 = scmp.ne.s32.totalorder %s28_s16, %s351_s24  ;;  %p357_p5 = scmp.lt.s32.totalorder %s351_s24, %s351_s24 }
   0xc   :  { %p358_p6 = por %p357_p5, %p356_p4 }
   0xe   :  { %p359_p7 = pnand %p358_p6, %p352_p3 }
  0x10   :  { %362 = shalt.err (!%p359_p7)
}
  0x11   :  { %s436_s25 = smov 128   ;;  %s437_s26 = smov 8  }
  0x12   :  { %33 = dma.hbm_to_vmem [thread:$0]  %s538_s1, 256, %s28_s16, [#allocation6], %s436_s25, %s436_s25, %s437_s26  }
  0x13   :  { %s438_s29 = smov [#allocation2]   ;;  %s439_s5 = smov [#allocation7]  }
  0x14   :  { %s18_s30 = sshll.u32 %s438_s29, 4  ;;  %s39_s6 = sshll.u32 %s439_s5, 4  ;;  %s19_s30 = int_to_ptr.vmem [resolvable:$true] %s18_s30  ;;  %s40_s6 = int_to_ptr.vmem [resolvable:$true] %s39_s6 }
  0x15   :  { %s363_s9 = scalar_lea.hbm %s537_s0, 32 }
  0x16   :  { %p364_p8 = scmp.ne.s32.totalorder %s537_s0, %s363_s9  ;;  %p367_p9 = scmp.lt.u32.totalorder %s363_s9, %s537_s0 }
  0x18   :  { %p369_p10 = pnand %p367_p9, %p364_p8 }
  0x1a   :  { %372 = shalt.err (!%p369_p10)
}
  0x1b   :  { %s373_s1 = scalar_lea.vmem %s19_s30, 32  ;;  %p378_p12 = scmp.lt.s32.totalorder %s19_s30, %s19_s30 }
  0x1c   :  { %p374_p11 = scmp.ne.s32.totalorder %s19_s30, %s373_s1  ;;  %p379_p13 = scmp.lt.s32.totalorder %s373_s1, %s373_s1 }
  0x1e   :  { %p380_p0 = por %p379_p13, %p378_p12 }
  0x20   :  { %p381_p1 = pnand %p380_p0, %p374_p11 }
  0x22   :  { %384 = shalt.err (!%p381_p1)
}
  0x23   :  { %21 = dma.hbm_to_vmem [thread:$0]  %s537_s0, 32, %s19_s30, [#allocation3]  }
  0x24   :  { %s385_s18 = scalar_lea.hbm %s539_s2, 256 }
  0x25   :  { %p386_p2 = scmp.ne.s32.totalorder %s539_s2, %s385_s18  ;;  %p389_p3 = scmp.lt.u32.totalorder %s385_s18, %s539_s2 }
  0x27   :  { %p391_p4 = pnand %p389_p3, %p386_p2 }
  0x29   :  { %394 = shalt.err (!%p391_p4)
}
  0x2a   :  { %s395_s23 = scalar_lea.vmem %s40_s6, 256  ;;  %p400_p6 = scmp.lt.s32.totalorder %s40_s6, %s40_s6 }
  0x2b   :  { %p396_p5 = scmp.ne.s32.totalorder %s40_s6, %s395_s23  ;;  %p401_p7 = scmp.lt.s32.totalorder %s395_s23, %s395_s23 }
  0x2d   :  { %p402_p8 = por %p401_p7, %p400_p6 }
  0x2f   :  { %p403_p9 = pnand %p402_p8, %p396_p5 }
  0x31   :  { %406 = shalt.err (!%p403_p9)
}
  0x32   :  { %45 = dma.hbm_to_vmem [thread:$0]  %s539_s2, 256, %s40_s6, [#allocation6], %s436_s25, %s436_s25, %s437_s26  }
  0x33   :  { %429 = dma.done.wait [#allocation3], 32  }
  0x34   :  { %430 = vsyncadd [#allocation3], 4294967264 }
  0x35   :  { %431 = dma.done.wait [#allocation6], 512  }
  0x36   :  { %432 = vsyncadd [#allocation6], 4294966784  ;;  %vm68_vm0 = vcmask 130048   ;;  %v59_v0 = vld [vmem:[#allocation7] sm:$0xff]  ;;  %v60_v1 = vld [vmem:[#allocation7 + $0x8] sm:$0xff]  ;;  %v165_v7 = vlaneseq  ;;  %vm188_vm1 = vcmask 261120  }
  0x37   :  { %v57_v2 = vld [vmem:[#allocation5] sm:$0xff]  ;;  %v317_v3 = vpack.c.bf16 %v60_v1, %v59_v0  ;;  %v58_v4 = vld [vmem:[#allocation5 + $0x8] sm:$0xff]  ;;  %v440_v5 = vmov 1966171168   ;;  %v302_v8 = vld [vmem:[%s540_s3] ss:$0 sm:$0xff] }
  0x38   :  { %314 = vmatprep.mubr.msk.f32.mxu0 %vm68_vm0, %v57_v2  ;;  %v163_v6 = vunpack.c.l.s4 %v440_v5  ;;  %v513_v10 = vshrl.u32 %v165_v7, 7  ;;  %v305_v15 = vld.sshfl [vmem:[#allocation2] sm:$0x11 pattern:$0x75316420]  ;;  %v198_v29 = vand.u32 127, %v165_v7 }
  0x39   :  { %318 = vmatprep.subr.bf16.mxu0 %v317_v3  ;;  %v161_v17 = vcombine.high %v305_v15, %v305_v15  ;;  %vm207_vm2 = vcmask 1041409   ;;  %vm210_vm3 = vcmask 58368   ;;  %v441_v37 = vmov 0   ;;  %s442_s2 = smov [#allocation8]  }
  0x3a   :  { %320 = vmatpush3.bf16.msra.mxu0 %v317_v3  ;;  %v164_v9 = vunpack.c.0.s8 %v163_v6  ;;  %v178_v19 = vsub.s32 0, %v513_v10  ;;  %v201_v31 = vsub.s32 %v198_v29, %v513_v10  ;;  %330 = vset.pattern.permute.xlu0 %v441_v37  ;;  %v221_v38 = vsub.s32 1, %v513_v10  ;;  %s292_s3 = sshll.u32 %s442_s2, 4  ;;  %s293_s3 = int_to_ptr.vmem [resolvable:$true] %s292_s3 }
  0x3b   :  { %329 = vset.pattern.permute.xlu1 %v441_v37  ;;  %s407_s25 = scalar_lea.vmem %s293_s3, 32  ;;  %p412_p11 = scmp.lt.s32.totalorder %s293_s3, %s293_s3 }
  0x3c   :  { %v167_v16 = vsub.s32 %v164_v9, %v513_v10  ;;  %p408_p10 = scmp.ne.s32.totalorder %s293_s3, %s407_s25  ;;  %p413_p12 = scmp.lt.s32.totalorder %s407_s25, %s407_s25 }
  0x3d   :  { %315 = vmatmul.mubr.msk.f32.vlgmr.msra.gmra.mrb[0].mxu0 %vm68_vm0, %v58_v4 }
  0x3e   :  { %v168_v18 = vrot.slane %v305_v15, %v167_v16  ;;  %v175_v20 = vrot.slane %v161_v17, %v167_v16  ;;  %p414_p13 = por %p413_p12, %p412_p11 }
  0x40   :  { %v179_v21 = vrot.slane %v168_v18, %v178_v19  ;;  %v183_v23 = vrot.slane %v175_v20, %v178_v19  ;;  %p415_p0 = pnand %p414_p13, %p408_p10 }
 0x110   :  { %v316_v11 = vpop.f32.mrb[0].mxu0 }
 0x111   :  { %v147_v12 = vadd.f32 %v316_v11, %v302_v8  ;;  %v141_v13 = vpop.f32.mrb[1].mxu0 }
 0x112   :  { %v142_v14 = vadd.f32 %v302_v8, %v141_v13 }
 0x113   :  { %331 = vtanh.f32 %v147_v12 }
 0x114   :  { %333 = vtanh.f32 %v142_v14 }
 0x11d   :  { %v332_v22 = vpop.eup %331 }
 0x11e   :  { %v334_v24 = vpop.eup %333  ;;  %v187_v27 = vmul.f32 %v332_v22, %v183_v23 }
 0x11f   :  { %v186_v25 = vmul.f32 %v334_v24, %v179_v21 }
 0x120   :  { %v192_v28 = vsel %vm188_vm1, %v187_v27, 0.0 }
 0x121   :  { %v189_v26 = vsel %vm188_vm1, %v186_v25, 0.0 }
 0x122   :  { %190 = vadd.xlane.f32.xlu0 %v189_v26 }
 0x126   :  { %193 = vadd.xlane.f32.xlu0 %v192_v28 }
 0x1af   :  { %v191_v30 = vpop.xlane.xlu0 %190 }
 0x1b0   :  { %v202_v33 = vrot.slane %v191_v30, %v201_v31 }
 0x1b3   :  { %v194_v32 = vpop.xlane.xlu0 %193 }
 0x1b4   :  { %v206_v34 = vrot.slane %v194_v32, %v201_v31 }
 0x1b6   :  { %v208_v35 = vsel %vm207_vm2, %v206_v34, %v202_v33 }
 0x1b7   :  { %v211_v36 = vsel %vm210_vm3, %v208_v35, -inf }
 0x1b8   :  { %212 = vmax.xlane.f32.xlu1 %v211_v36 }
 0x245   :  { %v213_v39 = vpop.xlane.xlu1 %212 }
 0x246   :  { %v218_v40 = vrot.slane %v213_v39, %v178_v19  ;;  %v222_v41 = vrot.slane %v213_v39, %v221_v38 }
 0x248   :  { %v225_v42 = vsub.f32 %v191_v30, %v218_v40  ;;  %v226_v43 = vsub.f32 %v194_v32, %v222_v41 }
 0x24a   :  { %v227_v44 = vmul.f32 1.442695, %v225_v42  ;;  %v229_v45 = vmul.f32 1.442695, %v226_v43 }
 0x24c   :  { %335 = vpow2.f32 %v227_v44 }
 0x24d   :  { %337 = vpow2.f32 %v229_v45 }
 0x256   :  { %v336_v46 = vpop.eup %335 }
 0x257   :  { %v338_v47 = vpop.eup %337  ;;  %234 = vperm.xlu1 %329, %v336_v46  }
 0x258   :  { %237 = vperm.xlu0 %330, %v338_v47  }
 0x2d6   :  { %v235_v48 = vpop.permute.xlu1 %234 }
 0x2d7   :  { %v238_v49 = vpop.permute.xlu0 %237  ;;  %v242_v50 = vrot.slane %v235_v48, %v201_v31 }
 0x2d8   :  { %v246_v51 = vrot.slane %v238_v49, %v201_v31 }
 0x2da   :  { %v247_v52 = vsel %vm207_vm2, %v246_v51, %v242_v50 }
 0x2db   :  { %v249_v53 = vsel %vm210_vm3, %v247_v52, 0.0 }
 0x2dc   :  { %250 = vadd.xlane.f32.xlu1 %v249_v53 }
 0x369   :  { %v251_v54 = vpop.xlane.xlu1 %250 }
 0x36a   :  { %339 = vlog2.f32 %v251_v54 }
 0x374   :  { %v340_v55 = vpop.eup %339 }
 0x375   :  { %v253_v56 = vmul.f32 0.6931472, %v340_v55 }
 0x377   :  { %v258_v57 = vrot.slane %v253_v56, %v178_v19  ;;  %v262_v58 = vrot.slane %v253_v56, %v221_v38 }
 0x379   :  { %v265_v59 = vsub.f32 %v225_v42, %v258_v57  ;;  %v266_v60 = vsub.f32 %v226_v43, %v262_v58 }
 0x37b   :  { %270 = vperm.xlu0 %330, %v265_v59  }
 0x37f   :  { %273 = vperm.xlu0 %330, %v266_v60  }
 0x3fa   :  { %v271_v61 = vpop.permute.xlu0 %270 }
 0x3fb   :  { %v278_v63 = vrot.slane %v271_v61, %v201_v31 }
 0x3fe   :  { %v274_v62 = vpop.permute.xlu0 %273 }
 0x3ff   :  { %v282_v0 = vrot.slane %v274_v62, %v201_v31 }
 0x401   :  { %v283_v1 = vsel %vm207_vm2, %v282_v0, %v278_v63 }
 0x402   :  { %285 = vst.msk [vmem:[#allocation8] sm:$0x3] %vm210_vm3, %v283_v1 }
 0x403   :  { %418 = shalt.err (!%p415_p0)
}
 0x404   :  { %s419_s30 = scalar_lea.hbm %s541_s4, 32 }
 0x405   :  { %p420_p1 = scmp.ne.s32.totalorder %s541_s4, %s419_s30  ;;  %p423_p2 = scmp.lt.u32.totalorder %s419_s30, %s541_s4 }
 0x407   :  { %p425_p3 = pnand %p423_p2, %p420_p1 }
 0x409   :  { %428 = shalt.err (!%p425_p3)
}
 0x40a   :  { %295 = dma.vmem_to_hbm [thread:$0]  %s293_s3, 32, %s541_s4, [#allocation4]  }
 0x40b   :  { %433 = dma.done.wait [#allocation4], 32  }
 0x40c   :  { %434 = vsyncadd [#allocation4], 4294967264 }
 0x40d   :  { %299 = vsyncpa [#allocation3], 1 }
 0x40e   :  { %300 = vsyncpa [#allocation6], 1 }
 0x40f   :  { %301 = vsyncpa [#allocation4], 1 }

</bundles_post_ra>
